<compile_context>
chip_gen: v7x
topology: tpu7x:2x2x1
jax: 0.10.0
libtpu: 0.0.40
codegen_flags: <defaults>
</compile_context>

<pallas_src>
import jax
import jax.numpy as jnp
from jax.experimental import pallas as pl
from jax.experimental.pallas import tpu as pltpu


def _round_up(x, m):
    return ((x + m - 1) // m) * m


def _softplus(x):
    # mirrors torch.nn.functional.softplus (beta=1, threshold=20)
    return jnp.where(x > 20.0, x, jnp.log(1.0 + jnp.exp(jnp.minimum(x, 20.0))))


def _nllpc_hazard_kernel(phi_ref, side_ref, out_ref):
    """One (event, batch-tile) grid step.

    phi_ref  : (1, tileB, T)  logits in natural layout (batch on sublanes, time on lanes)
    side_ref : (1, tileB, 3)  columns [idx, event, fraction]; idx < 0 marks dropped/pad rows
    out_ref  : (1, 1, 8, 128) sublane 0 = sum of kept per-sample losses, sublane 1 = kept count
    """
    phi = phi_ref[0].astype(jnp.float32)            # (tileB, T)
    side = side_ref[0]                              # (tileB, 3)
    idx_f = side[:, 0:1]                            # (tileB, 1) integer-valued float
    ev = side[:, 1:2]                               # (tileB, 1)
    frac = side[:, 2:3]                             # (tileB, 1)

    haz = _softplus(phi)                            # full-tile VPU/EUP work

    idx = idx_f.astype(jnp.int32)
    t = jax.lax.broadcasted_iota(jnp.int32, phi.shape, 1)   # time-bin id on lanes
    at_idx = t == idx                               # one-hot over time bins
    upto = t <= idx                                 # bins <= idx

    h_e = jnp.sum(jnp.where(at_idx, haz, 0.0), axis=1, keepdims=True)     # haz[idx]
    phi_e = jnp.sum(jnp.where(at_idx, phi, 0.0), axis=1, keepdims=True)   # phi[idx]
    # sum_{j < idx} haz_j  (derived from the <= reduce: one fewer select+reduce)
    sum_before = jnp.sum(jnp.where(upto, haz, 0.0), axis=1, keepdims=True) - h_e

    # pycox log_softplus: log(softplus(x)) if x >= -15 else x.  The max() only
    # guards dropped / padded rows (where phi_e == h_e == 0) against log(0);
    # those rows are zeroed by the keep-select below anyway.
    log_h_e = jnp.where(phi_e >= -15.0, jnp.log(jnp.maximum(h_e, 1e-37)), phi_e)

    keep = idx_f >= 0.0                             # (tileB, 1) bool
    per = -ev * log_h_e + frac * h_e + sum_before
    per = jnp.where(keep, per, 0.0)                 # also neutralizes ragged-tail garbage

    num = jnp.sum(per)
    cnt = jnp.sum(jnp.where(keep, 1.0, 0.0))

    sub = jax.lax.broadcasted_iota(jnp.int32, (8, 128), 0)
    out_ref[0, 0] = jnp.where(sub == 0, num, jnp.where(sub == 1, cnt, 0.0))


def _pick_batch_tile(B, T, requested=None):
    """Rows per batch tile, derived from a conservative VMEM budget.

    A (tileB, T<=128) f32 block occupies tileB * 512 B in VMEM (lanes padded to
    128).  Budget ~12 such full-tile values (2x double-buffered phi + 2x side +
    ~8 temporaries) against 16 MiB so we stay well under the 32 MiB limit we
    request (safe on v7x's 64 MiB physical VMEM and on v5e's 16 MiB default).
    """
    lane_bytes = 4 * max(128, _round_up(T, 128))
    per_row = 12 * lane_bytes
    budget = 16 * 1024 * 1024
    max_tile = max(8, (budget // per_row) // 8 * 8)
    if requested is not None:
        max_tile = max(8, min(max_tile, _round_up(int(requested), 8)))
    # Aim for >= 2 batch blocks so the "parallel" grid axis can shard across
    # both v7x TensorCores; on 1-TC chips the extra step costs ~0.35us, i.e. nothing.
    want = _round_up(pl.cdiv(B, 2), 8)
    tile = min(max_tile, want)
    if tile >= B:
        return B, 1            # one full block (block == full array dim is always legal)
    return tile, pl.cdiv(B, tile)


def satnllpc_hazard_loss_forward(logits, references, weights=None, *, batch_tile=None):
    """SATNLLPCHazardLoss.forward.

    logits:     (B, num_events, T) float (any float dtype; upcast to f32 in-kernel)
    references: (B, 4*num_events)  columns [percentiles | events | fractions | durations]
    """
    B, E, T = logits.shape
    if weights is None:
        weights = jnp.ones((E + 1,), jnp.float32)   # importance_sample_weights=None
    weights = weights.astype(jnp.float32)

    tile, G = _pick_batch_tile(B, T, requested=batch_tile)
    Bpad = tile * G

    # Tiny per-sample side table (E, Bpad, 3): [idx, event, fraction].  idx is
    # clipped to T-1 (pycox's gather would be OOB otherwise); padded rows get
    # idx = -1 so the keep-mask drops them.  Cost: O(B*E) bytes, negligible.
    idx = jnp.minimum(references[:, 0:E].astype(jnp.float32), jnp.float32(T - 1))
    ev = (references[:, E:2 * E] != 0).astype(jnp.float32)
    frac = references[:, 2 * E:3 * E].astype(jnp.float32)
    side = jnp.moveaxis(jnp.stack([idx, ev, frac], axis=-1), 1, 0)     # (E, B, 3)
    if Bpad > B:
        side = jnp.concatenate(
            [side, jnp.full((E, Bpad - B, 3), -1.0, jnp.float32)], axis=1)

    # Logits stay in their natural layout; (B,E,T)->(E,B,T) is a pure metadata
    # move for E == 1 (module default), so nothing is re-materialized in HBM.
    # The ragged last batch block is NOT padded: its out-of-bounds rows are
    # select-masked in-kernel via the padded side table.
    phi = jnp.moveaxis(logits, 1, 0)                                   # (E, B, T)

    out = pl.pallas_call(
        _nllpc_hazard_kernel,
        out_shape=jax.ShapeDtypeStruct((E, G, 8, 128), jnp.float32),
        grid=(E, G),
        in_specs=[
            pl.BlockSpec((1, tile, T), lambda e, i: (e, i, 0)),
            pl.BlockSpec((1, tile, 3), lambda e, i: (e, i, 0)),
        ],
        out_specs=pl.BlockSpec((1, 1, 8, 128), lambda e, i: (e, i, 0, 0)),
        compiler_params=pltpu.CompilerParams(
            dimension_semantics=("parallel", "parallel"),
            vmem_limit_bytes=32 * 1024 * 1024),
    )(phi, side)

    num = jnp.sum(out[:, :, 0, 0], axis=1)          # (E,) sum of kept per-sample losses
    cnt = jnp.sum(out[:, :, 1, 0], axis=1)          # (E,) number of kept samples
    # num/cnt is NaN when a batch has zero kept samples -- same as torch
    # `tensor([]).mean()` in the reference module.
    return jnp.sum((num / cnt) * weights[1:E + 1])


def reference_loss(logits, references, weights=None):
    """Pure-JAX reference of SATNLLPCHazardLoss.forward (pycox NLLPCHazardLoss)."""
    B, E, T = logits.shape
    if weights is None:
        weights = jnp.ones((E + 1,), jnp.float32)
    total = jnp.float32(0.0)
    rows = jnp.arange(B)
    for i in range(E):
        phi = logits[:, i, :].astype(jnp.float32)
        idx = references[:, i].astype(jnp.int32)
        ev = (references[:, E + i] != 0).astype(jnp.float32)
        frac = references[:, 2 * E + i].astype(jnp.float32)
        keep = idx >= 0
        idxc = jnp.clip(idx, 0, T - 1)
        haz = _softplus(phi)
        h_e = haz[rows, idxc]
        phi_e = phi[rows, idxc]
        log_h_e = jnp.where(phi_e >= -15.0, jnp.log(h_e), phi_e)
        cum = jnp.cumsum(haz, axis=1)
        sum_haz = jnp.where(idxc > 0, cum[rows, jnp.maximum(idxc - 1, 0)], 0.0)
        per = -ev * log_h_e + frac * h_e + sum_haz
        per = jnp.where(keep, per, 0.0)
        total = total + (jnp.sum(per) / jnp.sum(keep)) * weights[i + 1]
    return total


if __name__ == "__main__":
    key = jax.random.PRNGKey(0)

    # 1) small single-event case (num_events=1, batch=8, 8 duration cuts)
    B, E, T = 8, 1, 8
    k1, k2, k3, k4 = jax.random.split(key, 4)
    logits = jax.random.normal(k1, (B, E, T), dtype=jnp.float32)
    idx = jax.random.randint(k2, (B,), 0, T).astype(jnp.float32)
    events = jax.random.bernoulli(k3, 0.7, (B,)).astype(jnp.float32)
    fractions = jax.random.uniform(k4, (B,), dtype=jnp.float32)
    durations = jnp.zeros((B,), jnp.float32)        # unused by this loss
    references = jnp.stack([idx, events, fractions, durations], axis=1)

    loss = jax.block_until_ready(satnllpc_hazard_loss_forward(logits, references))
    ref = reference_loss(logits, references)
    assert jnp.allclose(loss, ref, rtol=1e-5, atol=1e-5), (loss, ref)

    # 2) multi-block grid path: ragged last batch block + dropped (idx < 0) rows
    B2 = 300
    k5, k6, k7, k8 = jax.random.split(jax.random.PRNGKey(1), 4)
    logits2 = jax.random.normal(k5, (B2, E, T), dtype=jnp.float32)
    idx2 = jax.random.randint(k6, (B2,), 0, T).astype(jnp.float32)
    idx2 = idx2.at[:5].set(-1.0)                    # pycox drops rows with idx < 0
    events2 = jax.random.bernoulli(k7, 0.6, (B2,)).astype(jnp.float32)
    frac2 = jax.random.uniform(k8, (B2,), dtype=jnp.float32)
    refs2 = jnp.stack([idx2, events2, frac2, jnp.zeros((B2,), jnp.float32)], axis=1)

    loss2 = jax.block_until_ready(satnllpc_hazard_loss_forward(logits2, refs2))
    ref2 = reference_loss(logits2, refs2)
    assert jnp.allclose(loss2, ref2, rtol=1e-5, atol=1e-5), (loss2, ref2)

    # explicit small batch_tile (forces 3 grid blocks, 2 of them ragged/padded)
    loss2b = jax.block_until_ready(
        satnllpc_hazard_loss_forward(logits2, refs2, batch_tile=128))
    assert jnp.allclose(loss2b, ref2, rtol=1e-5, atol=1e-5), (loss2b, ref2)

    # 3) multi-event path: the event axis is folded into the grid (one pallas_call)
    B3, E3, T3 = 64, 2, 12
    ka, kb, kc, kd = jax.random.split(jax.random.PRNGKey(2), 4)
    logits3 = jax.random.normal(ka, (B3, E3, T3), dtype=jnp.float32)
    idx3 = jax.random.randint(kb, (B3, E3), 0, T3).astype(jnp.float32)
    ev3 = jax.random.bernoulli(kc, 0.5, (B3, E3)).astype(jnp.float32)
    fr3 = jax.random.uniform(kd, (B3, E3), dtype=jnp.float32)
    dur3 = jnp.zeros((B3, E3), jnp.float32)
    refs3 = jnp.concatenate([idx3, ev3, fr3, dur3], axis=1)     # (B, 4*E)

    loss3 = jax.block_until_ready(satnllpc_hazard_loss_forward(logits3, refs3))
    ref3 = reference_loss(logits3, refs3)
    assert jnp.allclose(loss3, ref3, rtol=1e-5, atol=1e-5), (loss3, ref3)

    print("KERNEL_OK")
</pallas_src>

<mosaic_0001>
module attributes {stable_mosaic.version = 11 : i64} {
  func.func @_nllpc_hazard_kernel(%arg0: i32, %arg1: i32, %arg2: memref<1x8x8xf32, #tpu.memory_space<vmem>>, %arg3: memref<1x8x3xf32, #tpu.memory_space<vmem>>, %arg4: memref<1x1x8x128xf32, #tpu.memory_space<vmem>>) attributes {dimension_semantics = [#tpu.dimension_semantics<parallel>, #tpu.dimension_semantics<parallel>], iteration_bounds = array<i64: 1, 1>, scalar_prefetch = 0 : i64, scratch_operands = 0 : i64, tpu.core_type = #tpu.core_type<tc>, window_params = [{transform_indices = @transform_0, window_bounds = array<i64: 1, 8, 8>}, {transform_indices = @transform_1, window_bounds = array<i64: 1, 8, 3>}, {transform_indices = @transform_2, window_bounds = array<i64: 1, 1, 8, 128>}]} {
    %c0 = arith.constant 0 : index
    %c0_0 = arith.constant 0 : index
    %c0_1 = arith.constant 0 : index
    %0 = vector.load %arg2[%c0, %c0_0, %c0_1] : memref<1x8x8xf32, #tpu.memory_space<vmem>>, vector<1x8x8xf32>
    %1 = vector.shape_cast %0 : vector<1x8x8xf32> to vector<8x8xf32>
    %c0_2 = arith.constant 0 : index
    %c0_3 = arith.constant 0 : index
    %c0_4 = arith.constant 0 : index
    %2 = vector.load %arg3[%c0_2, %c0_3, %c0_4] : memref<1x8x3xf32, #tpu.memory_space<vmem>>, vector<1x8x3xf32>
    %3 = vector.shape_cast %2 : vector<1x8x3xf32> to vector<8x3xf32>
    %4 = vector.extract_strided_slice %3 {offsets = [0, 0], sizes = [8, 1], strides = [1, 1]} : vector<8x3xf32> to vector<8x1xf32>
    %5 = vector.extract_strided_slice %3 {offsets = [0, 1], sizes = [8, 1], strides = [1, 1]} : vector<8x3xf32> to vector<8x1xf32>
    %6 = vector.extract_strided_slice %3 {offsets = [0, 2], sizes = [8, 1], strides = [1, 1]} : vector<8x3xf32> to vector<8x1xf32>
    %cst = arith.constant 2.000000e+01 : f32
    %7 = vector.broadcast %cst : f32 to vector<8x8xf32>
    %8 = arith.cmpf ogt, %1, %7 : vector<8x8xf32>
    %cst_5 = arith.constant 2.000000e+01 : f32
    %9 = vector.broadcast %cst_5 : f32 to vector<8x8xf32>
    %10 = arith.minimumf %1, %9 : vector<8x8xf32>
    %11 = math.exp %10 : vector<8x8xf32>
    %cst_6 = arith.constant 1.000000e+00 : f32
    %12 = vector.broadcast %cst_6 : f32 to vector<8x8xf32>
    %13 = arith.addf %12, %11 : vector<8x8xf32>
    %14 = math.log %13 : vector<8x8xf32>
    %15 = arith.select %8, %1, %14 : vector<8x8xi1>, vector<8x8xf32>
    %16 = arith.fptosi %4 : vector<8x1xf32> to vector<8x1xi32>
    %17 = tpu.iota {dimensions = array<i32: 1>} : vector<8x8xi32>
    %18 = vector.broadcast %16 : vector<8x1xi32> to vector<8x8xi32>
    %19 = arith.cmpi eq, %17, %18 : vector<8x8xi32>
    %20 = vector.broadcast %16 : vector<8x1xi32> to vector<8x8xi32>
    %21 = arith.cmpi sle, %17, %20 : vector<8x8xi32>
    %cst_7 = arith.constant 0.000000e+00 : f32
    %22 = vector.broadcast %cst_7 : f32 to vector<8x8xf32>
    %23 = arith.select %19, %15, %22 : vector<8x8xi1>, vector<8x8xf32>
    %cst_8 = arith.constant dense<0.000000e+00> : vector<8xf32>
    %24 = vector.multi_reduction <add>, %23, %cst_8 [1] : vector<8x8xf32> to vector<8xf32>
    %25 = vector.shape_cast %24 : vector<8xf32> to vector<8x1xf32>
    %cst_9 = arith.constant 0.000000e+00 : f32
    %26 = vector.broadcast %cst_9 : f32 to vector<8x8xf32>
    %27 = arith.select %19, %1, %26 : vector<8x8xi1>, vector<8x8xf32>
    %cst_10 = arith.constant dense<0.000000e+00> : vector<8xf32>
    %28 = vector.multi_reduction <add>, %27, %cst_10 [1] : vector<8x8xf32> to vector<8xf32>
    %29 = vector.shape_cast %28 : vector<8xf32> to vector<8x1xf32>
    %cst_11 = arith.constant 0.000000e+00 : f32
    %30 = vector.broadcast %cst_11 : f32 to vector<8x8xf32>
    %31 = arith.select %21, %15, %30 : vector<8x8xi1>, vector<8x8xf32>
    %cst_12 = arith.constant dense<0.000000e+00> : vector<8xf32>
    %32 = vector.multi_reduction <add>, %31, %cst_12 [1] : vector<8x8xf32> to vector<8xf32>
    %33 = vector.shape_cast %32 : vector<8xf32> to vector<8x1xf32>
    %34 = arith.subf %33, %25 : vector<8x1xf32>
    %cst_13 = arith.constant -1.500000e+01 : f32
    %35 = vector.broadcast %cst_13 : f32 to vector<8x1xf32>
    %36 = arith.cmpf oge, %29, %35 : vector<8x1xf32>
    %cst_14 = arith.constant 9.99999991E-38 : f32
    %37 = vector.broadcast %cst_14 : f32 to vector<8x1xf32>
    %38 = arith.maximumf %25, %37 : vector<8x1xf32>
    %39 = math.log %38 : vector<8x1xf32>
    %40 = arith.select %36, %39, %29 : vector<8x1xi1>, vector<8x1xf32>
    %cst_15 = arith.constant 0.000000e+00 : f32
    %41 = vector.broadcast %cst_15 : f32 to vector<8x1xf32>
    %42 = arith.cmpf oge, %4, %41 : vector<8x1xf32>
    %cst_16 = arith.constant 0.000000e+00 : f32
    %43 = vector.broadcast %cst_16 : f32 to vector<8x1xf32>
    %44 = arith.subf %43, %5 : vector<8x1xf32>
    %45 = arith.mulf %44, %40 : vector<8x1xf32>
    %46 = arith.mulf %6, %25 : vector<8x1xf32>
    %47 = arith.addf %45, %46 : vector<8x1xf32>
    %48 = arith.addf %47, %34 : vector<8x1xf32>
    %cst_17 = arith.constant 0.000000e+00 : f32
    %49 = vector.broadcast %cst_17 : f32 to vector<8x1xf32>
    %50 = arith.select %42, %48, %49 : vector<8x1xi1>, vector<8x1xf32>
    %51 = vector.shape_cast %50 : vector<8x1xf32> to vector<1x8x1xf32>
    %cst_18 = arith.constant dense<0.000000e+00> : vector<1xf32>
    %52 = vector.multi_reduction <add>, %51, %cst_18 [1, 2] : vector<1x8x1xf32> to vector<1xf32>
    %53 = vector.shape_cast %52 : vector<1xf32> to vector<1x1x1xf32>
    %54 = vector.extract %53[0, 0, 0] : f32 from vector<1x1x1xf32>
    %cst_19 = arith.constant 1.000000e+00 : f32
    %cst_20 = arith.constant 0.000000e+00 : f32
    %55 = vector.broadcast %cst_19 : f32 to vector<8x1xf32>
    %56 = vector.broadcast %cst_20 : f32 to vector<8x1xf32>
    %57 = arith.select %42, %55, %56 : vector<8x1xi1>, vector<8x1xf32>
    %58 = vector.shape_cast %57 : vector<8x1xf32> to vector<1x8x1xf32>
    %cst_21 = arith.constant dense<0.000000e+00> : vector<1xf32>
    %59 = vector.multi_reduction <add>, %58, %cst_21 [1, 2] : vector<1x8x1xf32> to vector<1xf32>
    %60 = vector.shape_cast %59 : vector<1xf32> to vector<1x1x1xf32>
    %61 = vector.extract %60[0, 0, 0] : f32 from vector<1x1x1xf32>
    %62 = tpu.iota {dimensions = array<i32: 0>} : vector<8x128xi32>
    %c0_i32 = arith.constant 0 : i32
    %63 = vector.broadcast %c0_i32 : i32 to vector<8x128xi32>
    %64 = arith.cmpi eq, %62, %63 : vector<8x128xi32>
    %c1_i32 = arith.constant 1 : i32
    %65 = vector.broadcast %c1_i32 : i32 to vector<8x128xi32>
    %66 = arith.cmpi eq, %62, %65 : vector<8x128xi32>
    %cst_22 = arith.constant 0.000000e+00 : f32
    %67 = vector.broadcast %61 : f32 to vector<8x128xf32>
    %68 = vector.broadcast %cst_22 : f32 to vector<8x128xf32>
    %69 = arith.select %66, %67, %68 : vector<8x128xi1>, vector<8x128xf32>
    %70 = vector.broadcast %54 : f32 to vector<8x128xf32>
    %71 = arith.select %64, %70, %69 : vector<8x128xi1>, vector<8x128xf32>
    %c0_23 = arith.constant 0 : index
    %c0_24 = arith.constant 0 : index
    %c0_25 = arith.constant 0 : index
    %c0_26 = arith.constant 0 : index
    %72 = vector.load %arg4[%c0_23, %c0_24, %c0_25, %c0_26] : memref<1x1x8x128xf32, #tpu.memory_space<vmem>>, vector<1x1x8x128xf32>
    %73 = vector.shape_cast %72 : vector<1x1x8x128xf32> to vector<8x128xf32>
    %74 = vector.shape_cast %71 : vector<8x128xf32> to vector<1x1x8x128xf32>
    tpu.vector_store %arg4[%c0_23, %c0_24, %c0_25, %c0_26], %74 {strides = array<i32>} : memref<1x1x8x128xf32, #tpu.memory_space<vmem>>, vector<1x1x8x128xf32>,
    return
  }
  func.func @transform_0(%arg0: i32, %arg1: i32) -> (i32, i32, i32) {
    %c0_i32 = arith.constant 0 : i32
    %c0_i32_0 = arith.constant 0 : i32
    return %arg0, %arg1, %c0_i32 : i32, i32, i32
  }
  func.func @transform_1(%arg0: i32, %arg1: i32) -> (i32, i32, i32) {
    %c0_i32 = arith.constant 0 : i32
    %c0_i32_0 = arith.constant 0 : i32
    return %arg0, %arg1, %c0_i32 : i32, i32, i32
  }
  func.func @transform_2(%arg0: i32, %arg1: i32) -> (i32, i32, i32, i32) {
    %c0_i32 = arith.constant 0 : i32
    %c0_i32_0 = arith.constant 0 : i32
    %c0_i32_1 = arith.constant 0 : i32
    return %arg0, %arg1, %c0_i32, %c0_i32_0 : i32, i32, i32, i32
  }
}

</mosaic_0001>

<bundles_post_ra>
// kernel: tpu_custom_call.1
= control target key start
LH: loop header
LB: loop body
LE: loop exit
PB: predicated region body
PF: predicated region fallthrough
CT: control target
= control target key end

     0   :  { %s191_s0 = inlined_call_operand.vmem [shape: f32[1,8,8], index: 0, kind: input, shape index: {}]   ;;  %s192_s1 = inlined_call_operand.vmem [shape: f32[1,8,3], index: 1, kind: input, shape index: {}]   ;;  %s193_s2 = inlined_call_operand.hbm [shape: f32[1,1,8,128], index: 2, kind: output, shape index: {}]  }
   0x1   :  { %v13_v0 = vld [vmem:[%s192_s1] sm:$0xff] }
   0x2   :  { %7 = vsyncpa [#allocation3], 0  ;;  %v150_v1 = vmov 0   ;;  %v109_v2 = vtrunc.f32 %v13_v0  ;;  %v12_v4 = vld [vmem:[%s191_s0] sm:$0xff]  ;;  %v23_v10 = vlaneseq  ;;  %vm31_vm1 = vcmask 64512   ;;  %s152_s0 = smov 127  }
   0x3   :  { %119 = vset.pattern.permute.xlu0 %v150_v1  ;;  %v15_v5 = vmin.f32 %v12_v4, 20.0  ;;  %vm14_vm0 = vcmp.gt.f32.partialorder %v12_v4, 20.0  ;;  %vm49_vm4 = vcmp.ge.f32.partialorder %v13_v0, 0.0  ;;  %vm64_vm5 = vcmask 7168   ;;  %s153_s13 = smov [#allocation2]  }
   0x4   :  { %v110_v3 = vcvt.f32.s32 %v109_v2  ;;  %v24_v12 = vand.u32 127, %v23_v10  ;;  %v151_v21 = vmov 0.0   ;;  %v50_v30 = vsub.f32 0.0, %v13_v0  ;;  %s101_s14 = sshll.u32 %s153_s13, 4  ;;  %s102_s14 = int_to_ptr.vmem [resolvable:$true] %s101_s14 }
   0x5   :  { %v16_v6 = vmul.f32 1.442695, %v15_v5  ;;  %v75_v22 = vsel %vm49_vm4, 1.0, %v151_v21  ;;  %v87_v55 = vshrl.u32 %v23_v10, 7  ;;  %s126_s16 = scalar_lea.vmem %s102_s14, 128  ;;  %p131_p1 = scmp.lt.s32.totalorder %s102_s14, %s102_s14 }
   0x6   :  { %26 = vperm.xlu0 %119, %v110_v3   ;;  %v76_v23 = vsel %vm64_vm5, %v75_v22, 0.0  ;;  %p127_p0 = scmp.ne.s32.totalorder %s102_s14, %s126_s16  ;;  %p132_p2 = scmp.lt.s32.totalorder %s126_s16, %s126_s16 }
   0x7   :  { %120 = vpow2.f32 %v16_v6  ;;  %vm89_vm7 = vcmp.eq.s32.totalorder %v87_v55, 1  ;;  %vm88_vm8 = vcmp.eq.s32.totalorder %v87_v55, 0 }
   0x8   :  { %p133_p3 = por %p132_p2, %p131_p1 }
   0xa   :  { %p134_p4 = pnand %p133_p3, %p127_p0 }
  0x11   :  { %v121_v7 = vpop.eup %120 }
  0x12   :  { %v18_v8 = vadd.f32 1.0, %v121_v7 }
  0x14   :  { %122 = vlog2.f32 %v18_v8 }
  0x1e   :  { %v123_v9 = vpop.eup %122 }
  0x1f   :  { %v20_v11 = vmul.f32 0.6931472, %v123_v9 }
  0x21   :  { %v21_v13 = vsel %vm14_vm0, %v12_v4, %v20_v11 }
  0x85   :  { %v27_v14 = vpop.permute.xlu0 %26 }
  0x86   :  { %vm29_vm2 = vcmp.le.s32.totalorder %v24_v12, %v27_v14  ;;  %vm28_vm3 = vcmp.eq.s32.totalorder %v24_v12, %v27_v14 }
  0x87   :  { %v35_v15 = vsel %vm28_vm3, %v12_v4, 0.0  ;;  %v30_v16 = vsel %vm28_vm3, %v21_v13, 0.0  ;;  %v39_v19 = vsel %vm29_vm2, %v21_v13, 0.0 }
  0x88   :  { %v36_v17 = vsel %vm31_vm1, %v35_v15, 0.0  ;;  %v32_v18 = vsel %vm31_vm1, %v30_v16, 0.0  ;;  %v40_v20 = vsel %vm31_vm1, %v39_v19, 0.0 }
  0x89   :  { %37 = vadd.xlane.f32.xlu1 %v36_v17  ;;  %33 = vadd.xlane.f32.xlu0 %v32_v18 }
  0x8d   :  { %41 = vadd.xlane.f32.xlu1 %v40_v20  ;;  %77 = vadd.xlane.f32.xlu0 %v76_v23 }
 0x116   :  { %v34_v24 = vpop.xlane.xlu0 %33  ;;  %v38_v28 = vpop.xlane.xlu1 %37 }
 0x117   :  { %v52_v25 = vmul.f32 %v34_v24, %v13_v0  ;;  %v45_v26 = vmax.f32 %v34_v24, 1e-37  ;;  %vm44_vm6 = vcmp.ge.f32.partialorder %v38_v28, -15.0 }
 0x119   :  { %54 = vrot.lane.b32.xlu1 %v52_v25, %s152_s0  ;;  %124 = vlog2.f32 %v45_v26 }
 0x11a   :  { %v42_v31 = vpop.xlane.xlu1 %41  ;;  %v78_v41 = vpop.xlane.xlu0 %77 }
 0x11b   :  { %v43_v35 = vsub.f32 %v42_v31, %v34_v24  ;;  %v79_v42 = vrot.slane %v78_v41, 4 }
 0x11d   :  { %v80_v43 = vadd.f32 %v79_v42, %v78_v41 }
 0x11f   :  { %v81_v44 = vrot.slane %v80_v43, 2 }
 0x121   :  { %v82_v48 = vadd.f32 %v81_v44, %v80_v43 }
 0x123   :  { %v125_v27 = vpop.eup %124  ;;  %v83_v51 = vrot.slane %v82_v48, 1 }
 0x124   :  { %v47_v29 = vmul.f32 0.6931472, %v125_v27 }
 0x125   :  { %v84_v54 = vadd.f32 %v83_v51, %v82_v48 }
 0x126   :  { %v48_v32 = vsel %vm44_vm6, %v47_v29, %v38_v28 }
 0x127   :  { %v51_v33 = vmul.f32 %v50_v30, %v48_v32 }
 0x18b   :  { %v55_v34 = vpop.permute.xlu1 %54 }
 0x18c   :  { %v57_v36 = vadd.f32 %v55_v34, %v51_v33 }
 0x18e   :  { %v58_v37 = vadd.f32 %v57_v36, %v43_v35 }
 0x190   :  { %60 = vrot.lane.b32.xlu1 %v58_v37, %s152_s0 }
 0x202   :  { %v61_v38 = vpop.permute.xlu1 %60 }
 0x203   :  { %v63_v39 = vsel %vm49_vm4, %v61_v38, 0.0 }
 0x204   :  { %v65_v40 = vsel %vm64_vm5, %v63_v39, 0.0 }
 0x205   :  { %66 = vadd.xlane.f32.xlu1 %v65_v40 }
 0x292   :  { %v67_v45 = vpop.xlane.xlu1 %66 }
 0x293   :  { %v68_v46 = vrot.slane %v67_v45, 4 }
 0x295   :  { %v69_v47 = vadd.f32 %v68_v46, %v67_v45 }
 0x297   :  { %v70_v49 = vrot.slane %v69_v47, 2 }
 0x299   :  { %v71_v50 = vadd.f32 %v70_v49, %v69_v47 }
 0x29b   :  { %v72_v52 = vrot.slane %v71_v50, 1 }
 0x29d   :  { %v73_v53 = vadd.f32 %v72_v52, %v71_v50 }
 0x29f   :  { %111 = vpush %v73_v53 }
 0x2a0   :  { %113 = vpush %v84_v54 }
 0x2d0   :  { %s112_s1 = spop %111 }
 0x2d1   :  { %v92_v56 = vstv %s112_s1  ;;  %s114_s15 = spop %113 }
 0x2d2   :  { %v90_v57 = vstv %s114_s15 }
 0x2d3   :  { %v91_v58 = vsel %vm89_vm7, %v90_v57, 0.0 }
 0x2d4   :  { %v93_v59 = vsel %vm88_vm8, %v92_v56, %v91_v58 }
 0x2d5   :  { %94 = vst [vmem:[#allocation2] sm:$0xff] %v93_v59 }
 0x2d6   :  { %137 = shalt.err (!%p134_p4)
}
 0x2d7   :  { %s138_s19 = scalar_lea.hbm %s193_s2, 128 }
 0x2d8   :  { %p139_p5 = scmp.ne.s32.totalorder %s193_s2, %s138_s19  ;;  %p142_p6 = scmp.lt.u32.totalorder %s138_s19, %s193_s2 }
 0x2da   :  { %p144_p7 = pnand %p142_p6, %p139_p5 }
 0x2dc   :  { %147 = shalt.err (!%p144_p7)
}
 0x2dd   :  { %104 = dma.vmem_to_hbm [thread:$0]  %s102_s14, 128, %s193_s2, [#allocation3]  }
 0x2de   :  { %148 = dma.done.wait [#allocation3], 128  }
 0x2df   :  { %149 = vsyncadd [#allocation3], 4294967168 }
 0x2e0   :  { %108 = vsyncpa [#allocation3], 1 }

</bundles_post_ra>
